<compile_context>
chip_gen: v7x
topology: tpu7x:2x2x1
jax: 0.10.0
libtpu: 0.0.40
codegen_flags: <defaults>
</compile_context>

<pallas_src>
import functools
import math

import jax
import jax.numpy as jnp
from jax.experimental import pallas as pl
from jax.experimental.pallas import tpu as pltpu


# ----------------------------------------------------------------------------
# Kernel 1: pooled mean over the sequence (memory-bound streaming)
# ----------------------------------------------------------------------------
def _pool_kernel(x_ref, o_ref, *, seq_len):
    @pl.when(pl.program_id(1) == 0)
    def _init():
        o_ref[...] = jnp.zeros_like(o_ref)

    o_ref[...] += jnp.sum(x_ref[...].astype(jnp.float32), axis=1, keepdims=True)

    @pl.when(pl.program_id(1) == pl.num_programs(1) - 1)
    def _finalize():
        o_ref[...] = o_ref[...] * (1.0 / seq_len)


# ----------------------------------------------------------------------------
# Kernel 2: tiny single-shot prism MLP + CALM exit + aux loss + gate*var scalar
# ----------------------------------------------------------------------------
def _score_kernel(pooled_ref, w1_ref, b1_ref, w2_ref, b2_ref, exit_beta_ref,
                  gv_ref, aux_ref, exit_ref, *,
                  max_num_experts, current_num_experts, depth, actual_index,
                  expert_idx, next_idx, training):
    E = current_num_experts
    Emax = max_num_experts

    pooled = pooled_ref[...].astype(jnp.float32)                 # (B, H)

    # prism MLP (Dropout p=0 -> identity)
    h = jnp.dot(pooled, w1_ref[...].astype(jnp.float32),
                preferred_element_type=jnp.float32) + b1_ref[...].astype(jnp.float32)
    h = jnp.maximum(h, 0.0)
    logits = jnp.dot(h, w2_ref[...].astype(jnp.float32),
                     preferred_element_type=jnp.float32) + b2_ref[...].astype(jnp.float32)

    current = logits[:, 0:E]
    routing = logits[:, Emax:Emax + E]
    exitl = logits[:, 2 * Emax:2 * Emax + E]
    gating = logits[:, 3 * Emax:3 * Emax + E]

    # CALM early exit
    exit_score = jnp.mean(jax.nn.sigmoid(exitl))                 # scalar
    thr = jax.nn.sigmoid(exit_beta_ref[0, 0])                    # scalar (SMEM)
    should_exit = (exit_score > thr).astype(jnp.float32)
    layer_progress = 1.0 - actual_index / depth
    exitl = exitl * (thr * layer_progress)                       # (B, E)

    # factorized variance: var_E(scale * map[h]) = var_E(scale) * map[h]^2
    # NOTE: matches torch.var(ddof=1); E == 1 gives inf/nan (same as torch).
    scale = (current * routing) / (exitl + 1e-6)                 # (B, E)
    mu = jnp.mean(scale, axis=1, keepdims=True)
    var = jnp.sum((scale - mu) ** 2, axis=1, keepdims=True) / (E - 1)
    gate = jax.nn.sigmoid(jnp.mean(gating, axis=1, keepdims=True))
    gv_ref[...] = (gate * var).astype(gv_ref.dtype)              # (B, 1)

    # auxiliary losses
    def ce(lg, idx):
        m = jnp.max(lg, axis=-1, keepdims=True)
        lse = m + jnp.log(jnp.sum(jnp.exp(lg - m), axis=-1, keepdims=True))
        return jnp.mean(lse - lg[:, idx:idx + 1])

    aux = ce(current, expert_idx) * 0.01
    if training and actual_index < depth - 1:
        aux = aux + ce(routing, next_idx) * 0.01
        t = actual_index / depth
        bce = -(t * jnp.log(exit_score) + (1.0 - t) * jnp.log(1.0 - exit_score))
        aux = aux + bce * 0.01
    # TODO(synk): eval-mode torch.mode(argmax(routing)) / accuracy-dict
    # tracking is host-side Python state and stays outside the kernel.

    aux_ref[...] = aux * jnp.ones((1, 1), jnp.float32)
    exit_ref[...] = should_exit * jnp.ones((1, 1), jnp.float32)


# ----------------------------------------------------------------------------
# Kernel 3: tiled, memory-bound state update (gated scale + pos + LN + EMA)
# ----------------------------------------------------------------------------
def _state_kernel(gv_ref, x_ref, pos_w_ref, mapsq_ref, gamma_ref, beta_ref,
                  *rest, alpha, tile_rows, seq_len):
    if alpha is None:
        (o_ref,) = rest
        s_ref = None
    else:
        s_ref, o_ref = rest

    s_blk = pl.program_id(0)                                     # sequence-tile axis
    b = pl.program_id(1)                                         # batch axis
    gv = gv_ref[b, 0]                                            # SMEM scalar

    x = x_ref[...].astype(jnp.float32)                           # (1, ts, H)
    w = (gv * mapsq_ref[...].astype(jnp.float32))[:, None, :]    # (1, 1, H)

    # positional signal rebuilt in-register (saves a B*S*H HBM stream)
    row = (jax.lax.broadcasted_iota(jnp.int32, (1, tile_rows, 1), 1)
           + s_blk * tile_rows).astype(jnp.float32) * (1.0 / seq_len)
    pos_sig = jnp.sin((2.0 * math.pi) * row) \
        * pos_w_ref[...].astype(jnp.float32)[:, None, :]         # (1, ts, H)

    contrib = x * w + pos_sig

    # one-pass LayerNorm over H (eps=1e-5, biased variance); gamma/beta arrive
    # with the EMA alpha already folded in at trace time.
    mu = jnp.mean(contrib, axis=-1, keepdims=True)
    msq = jnp.mean(contrib * contrib, axis=-1, keepdims=True)
    inv = jax.lax.rsqrt(msq - mu * mu + 1e-5)
    scaled = ((contrib - mu) * inv
              * gamma_ref[...].astype(jnp.float32)[:, None, :]
              + beta_ref[...].astype(jnp.float32)[:, None, :])

    if alpha is None:                                            # layer 0
        o_ref[...] = scaled.astype(o_ref.dtype)
    else:                                                        # EMA blend
        prev = s_ref[...].astype(jnp.float32)
        o_ref[...] = ((1.0 - alpha) * prev + scaled).astype(o_ref.dtype)


# ----------------------------------------------------------------------------
# VMEM budgeting / tile selection
# ----------------------------------------------------------------------------
def _vmem_limit_bytes():
    """~75% of the chip's physical VMEM (96 MiB v5e/v6e, 48 MiB v7x)."""
    try:
        cap = pltpu.get_tpu_info().vmem_capacity_bytes
    except Exception:
        cap = 64 << 20                                            # safe fallback
    return int(cap) * 3 // 4


def _pick_seq_tile(S, row_bytes, budget_bytes, max_rows=2048):
    """Largest S-tile (multiple of 8 or == S, dividing S) fitting budget_bytes."""
    cap = min(max(1, budget_bytes // max(1, row_bytes)), max_rows)
    if cap >= S:
        return S
    for ts in range(cap, 0, -1):
        if S % ts == 0 and ts % 8 == 0:
            return ts
    # TODO(synk): ragged S with no 8-multiple divisor <= cap falls back to the
    # full sequence (correct but may exceed the per-stream budget); a cdiv grid
    # with in-kernel masking would be needed to honour the budget.
    return S


# ----------------------------------------------------------------------------
# Wrapper
# ----------------------------------------------------------------------------
def praxis_controller_forward(params, expert_output, state_in=None, *, depth,
                              max_num_experts, current_num_experts,
                              actual_index, expert_idx, next_idx,
                              training=True):
    B, S, H = expert_output.shape
    Emax = max_num_experts
    itemsize = jnp.dtype(expert_output.dtype).itemsize
    vmem_limit = _vmem_limit_bytes()

    # ---------------- kernel 1: pooled mean over S ---------------------------
    pool_budget = max(8 * H * itemsize, int(vmem_limit * 0.45) // 2)
    ts_pool = _pick_seq_tile(S, H * itemsize, pool_budget)
    pooled = pl.pallas_call(
        functools.partial(_pool_kernel, seq_len=S),
        grid=(B, S // ts_pool),
        in_specs=[pl.BlockSpec((1, ts_pool, H), lambda b, s: (b, s, 0))],
        out_specs=pl.BlockSpec((1, 1, H), lambda b, s: (b, 0, 0)),
        out_shape=jax.ShapeDtypeStruct((B, 1, H), jnp.float32),
        compiler_params=pltpu.CompilerParams(
            dimension_semantics=("parallel", "arbitrary"),
            vmem_limit_bytes=vmem_limit),
    )(expert_output)
    pooled = pooled.reshape(B, H)

    # ---------------- kernel 2: MLP + scoring + aux loss ---------------------
    score_kern = functools.partial(
        _score_kernel,
        max_num_experts=Emax, current_num_experts=current_num_experts,
        depth=depth, actual_index=actual_index,
        expert_idx=expert_idx, next_idx=next_idx, training=training)
    gv, aux, exit_flag = pl.pallas_call(
        score_kern,
        in_specs=[
            pl.BlockSpec(memory_space=pltpu.MemorySpace.VMEM),    # pooled
            pl.BlockSpec(memory_space=pltpu.MemorySpace.VMEM),    # w1
            pl.BlockSpec(memory_space=pltpu.MemorySpace.VMEM),    # b1
            pl.BlockSpec(memory_space=pltpu.MemorySpace.VMEM),    # w2
            pl.BlockSpec(memory_space=pltpu.MemorySpace.VMEM),    # b2
            pl.BlockSpec(memory_space=pltpu.MemorySpace.SMEM),    # exit_beta
        ],
        out_specs=(
            pl.BlockSpec(memory_space=pltpu.MemorySpace.VMEM),
            pl.BlockSpec(memory_space=pltpu.MemorySpace.VMEM),
            pl.BlockSpec(memory_space=pltpu.MemorySpace.VMEM),
        ),
        out_shape=(
            jax.ShapeDtypeStruct((B, 1), jnp.float32),            # gate * var
            jax.ShapeDtypeStruct((1, 1), jnp.float32),            # aux loss
            jax.ShapeDtypeStruct((1, 1), jnp.float32),            # should_exit
        ),
        compiler_params=pltpu.CompilerParams(vmem_limit_bytes=vmem_limit),
    )(pooled, params["w1"], params["b1"], params["w2"], params["b2"],
      params["exit_beta"])

    # ---------------- precompute tiny per-layer constants --------------------
    map_sq = params["map"].astype(jnp.float32) ** 2               # (1, H)
    if actual_index == 0:
        alpha = None
        gamma_eff = params["gamma"].astype(jnp.float32)
        beta_eff = params["beta"].astype(jnp.float32)
    else:
        if state_in is None:
            raise ValueError("state_in required when actual_index > 0")
        alpha = 1.0 / (1.0 + math.exp(-(actual_index / depth)))
        gamma_eff = alpha * params["gamma"].astype(jnp.float32)   # fold EMA alpha
        beta_eff = alpha * params["beta"].astype(jnp.float32)

    # ---------------- kernel 3: tiled elementwise state update ---------------
    n_streams = 2 if alpha is None else 3                         # x, (state_in), out
    state_budget = max(8 * H * itemsize,
                       int(vmem_limit * 0.6) // (n_streams * 2))
    ts_state = _pick_seq_tile(S, H * itemsize, state_budget)

    st_kern = functools.partial(_state_kernel, alpha=alpha,
                                tile_rows=ts_state, seq_len=S)
    inputs = [gv, expert_output, params["position"], map_sq, gamma_eff, beta_eff]
    in_specs = [
        pl.BlockSpec(memory_space=pltpu.MemorySpace.SMEM),                 # gv (B,1)
        pl.BlockSpec((1, ts_state, H), lambda s, b: (b, s, 0)),            # x
        pl.BlockSpec((1, H), lambda s, b: (0, 0)),                         # position
        pl.BlockSpec((1, H), lambda s, b: (0, 0)),                         # map^2
        pl.BlockSpec((1, H), lambda s, b: (0, 0)),                         # alpha*gamma
        pl.BlockSpec((1, H), lambda s, b: (0, 0)),                         # alpha*beta
    ]
    io_alias = {}
    if alpha is not None:
        inputs.append(state_in)
        in_specs.append(pl.BlockSpec((1, ts_state, H), lambda s, b: (b, s, 0)))
        if (state_in.shape == expert_output.shape
                and state_in.dtype == expert_output.dtype):
            io_alias = {6: 0}                                              # in-place EMA

    state_out = pl.pallas_call(
        st_kern,
        grid=(S // ts_state, B),                  # larger axis leads (v7x megacore)
        in_specs=in_specs,
        out_specs=pl.BlockSpec((1, ts_state, H), lambda s, b: (b, s, 0)),
        out_shape=jax.ShapeDtypeStruct((B, S, H), expert_output.dtype),
        input_output_aliases=io_alias,
        compiler_params=pltpu.CompilerParams(
            dimension_semantics=("parallel", "parallel"),
            vmem_limit_bytes=vmem_limit),
    )(*inputs)

    recommended_next = None   # training path (eval-mode mode/argmax is host-side)
    should_exit = exit_flag[0, 0] > 0.5           # device array — no host sync here
    return aux[0, 0], recommended_next, should_exit, state_out


# ----------------------------------------------------------------------------
# Pure-JAX reference (mirrors the torch math) for verification
# ----------------------------------------------------------------------------
def _reference_forward(params, x, state_in, *, depth, max_num_experts,
                       current_num_experts, actual_index, expert_idx,
                       next_idx, training=True):
    Emax, E = max_num_experts, current_num_experts
    hp = jax.lax.Precision.HIGHEST
    x = x.astype(jnp.float32)
    pooled = x.mean(axis=1)
    h = jnp.maximum(jnp.dot(pooled, params["w1"], precision=hp) + params["b1"], 0.0)
    logits = jnp.dot(h, params["w2"], precision=hp) + params["b2"]
    current = logits[:, :E]
    routing = logits[:, Emax:Emax + E]
    exitl = logits[:, 2 * Emax:2 * Emax + E]
    gating = logits[:, 3 * Emax:3 * Emax + E]
    exit_score = jax.nn.sigmoid(exitl).mean()
    thr = jax.nn.sigmoid(params["exit_beta"][0, 0])
    should_exit = exit_score > thr
    exitl = exitl * thr * (1.0 - actual_index / depth)
    cr = current * routing
    entries = cr[:, :, None] * params["map"][None, :, :]
    ratio = entries / (exitl[:, :, None] + 1e-6)
    reduced = jnp.var(ratio, axis=1, keepdims=True, ddof=1)
    gate = jax.nn.sigmoid(gating.mean(axis=1, keepdims=True))[:, :, None]
    gated = gate * reduced
    S = x.shape[1]
    pos = (jnp.arange(S, dtype=jnp.float32) / S)[None, :, None]
    pos_signal = jnp.sin(2.0 * math.pi * pos) * params["position"][None, :, :]
    contrib = x * gated + pos_signal
    mu = contrib.mean(-1, keepdims=True)
    var = ((contrib - mu) ** 2).mean(-1, keepdims=True)
    normed = (contrib - mu) * jax.lax.rsqrt(var + 1e-5) * params["gamma"] + params["beta"]
    if actual_index == 0:
        new_state = normed
    else:
        alpha = 1.0 / (1.0 + math.exp(-(actual_index / depth)))
        new_state = (1.0 - alpha) * state_in + alpha * normed

    def ce(lg, idx):
        return jnp.mean(jax.nn.logsumexp(lg, axis=-1) - lg[:, idx])

    aux = ce(current, expert_idx) * 0.01
    if training and actual_index < depth - 1:
        aux = aux + ce(routing, next_idx) * 0.01
        t = actual_index / depth
        aux = aux + (-(t * jnp.log(exit_score)
                       + (1.0 - t) * jnp.log(1.0 - exit_score))) * 0.01
    return aux, bool(should_exit), new_state


# ----------------------------------------------------------------------------
# Demo
# ----------------------------------------------------------------------------
def _init_params(key, hidden, max_num_experts):
    h2 = hidden // 2
    ks = jax.random.split(key, 6)
    return {
        "w1": jax.random.normal(ks[0], (hidden, h2), jnp.float32) / math.sqrt(hidden),
        "b1": jnp.zeros((1, h2), jnp.float32),
        "w2": jax.random.normal(ks[1], (h2, 4 * max_num_experts), jnp.float32) * 0.01,
        "b2": jnp.full((1, 4 * max_num_experts), 0.1, jnp.float32),
        "map": jax.random.normal(ks[2], (1, hidden), jnp.float32),
        "position": jax.random.normal(ks[3], (1, hidden), jnp.float32),
        "gamma": jnp.ones((1, hidden), jnp.float32),
        "beta": jnp.zeros((1, hidden), jnp.float32),
        "exit_beta": jnp.full((1, 1), 0.5, jnp.float32),
    }


if __name__ == "__main__":
    B, S, H = 2, 8, 32
    depth, max_num_experts, current_num_experts = 3, 4, 3

    key = jax.random.PRNGKey(0)
    kp, kx0, kx1 = jax.random.split(key, 3)
    params = _init_params(kp, H, max_num_experts)

    x0 = jax.random.normal(kx0, (B, S, H), jnp.float32)
    x1 = jax.random.normal(kx1, (B, S, H), jnp.float32)

    cfg0 = dict(depth=depth, max_num_experts=max_num_experts,
                current_num_experts=current_num_experts,
                actual_index=0, expert_idx=0, next_idx=1, training=True)
    cfg1 = dict(depth=depth, max_num_experts=max_num_experts,
                current_num_experts=current_num_experts,
                actual_index=1, expert_idx=1, next_idx=2, training=True)

    # layer 0 (no state_in stream at all)
    aux0, _, exit0, state1 = praxis_controller_forward(params, x0, None, **cfg0)
    jax.block_until_ready((aux0, state1))
    r_aux0, r_exit0, r_state1 = _reference_forward(params, x0, None, **cfg0)

    assert jnp.allclose(aux0, r_aux0, atol=1e-3, rtol=1e-3), (aux0, r_aux0)
    assert bool(exit0) == r_exit0
    assert jnp.allclose(state1, r_state1, atol=5e-2, rtol=5e-2)

    # layer 1 (uses accumulated state; state_in aliased onto state_out)
    aux1, _, exit1, state2 = praxis_controller_forward(params, x1, state1, **cfg1)
    jax.block_until_ready((aux1, state2))
    r_aux1, r_exit1, r_state2 = _reference_forward(params, x1, r_state1, **cfg1)

    assert jnp.allclose(aux1, r_aux1, atol=1e-3, rtol=1e-3), (aux1, r_aux1)
    assert bool(exit1) == r_exit1
    assert jnp.allclose(state2, r_state2, atol=5e-2, rtol=5e-2)

    # bf16 I/O smoke run (kernels are dtype-agnostic; halves HBM traffic)
    aux_bf, _, exit_bf, state_bf = praxis_controller_forward(
        params, x0.astype(jnp.bfloat16), None, **cfg0)
    jax.block_until_ready((aux_bf, state_bf))
    assert state_bf.dtype == jnp.bfloat16
    assert bool(jnp.isfinite(state_bf.astype(jnp.float32)).all())
    assert bool(jnp.isfinite(aux_bf))

    print("KERNEL_OK")
</pallas_src>

<mosaic_0001>
module attributes {stable_mosaic.version = 11 : i64} {
  func.func @_pool_kernel(%arg0: i32, %arg1: i32, %arg2: memref<1x8x32xf32, #tpu.memory_space<vmem>>, %arg3: memref<1x1x32xf32, #tpu.memory_space<vmem>>) attributes {dimension_semantics = [#tpu.dimension_semantics<parallel>, #tpu.dimension_semantics<arbitrary>], iteration_bounds = array<i64: 2, 1>, scalar_prefetch = 0 : i64, scratch_operands = 0 : i64, tpu.core_type = #tpu.core_type<tc>, window_params = [{transform_indices = @transform_0, window_bounds = array<i64: 1, 8, 32>}, {transform_indices = @transform_1, window_bounds = array<i64: 1, 1, 32>}]} {
    %c0_i32 = arith.constant 0 : i32
    %0 = arith.cmpi eq, %arg1, %c0_i32 : i32
    %1 = arith.extui %0 : i1 to i32
    %c0_i32_0 = arith.constant 0 : i32
    %2 = arith.cmpi ne, %1, %c0_i32_0 : i32
    scf.if %2 {
      %cst_11 = arith.constant 0.000000e+00 : f32
      %12 = vector.broadcast %cst_11 : f32 to vector<1x1x32xf32>
      %c0_12 = arith.constant 0 : index
      %c0_13 = arith.constant 0 : index
      %c0_14 = arith.constant 0 : index
      %13 = vector.load %arg3[%c0_12, %c0_13, %c0_14] : memref<1x1x32xf32, #tpu.memory_space<vmem>>, vector<1x1x32xf32>
      tpu.vector_store %arg3[%c0_12, %c0_13, %c0_14], %12 {strides = array<i32>} : memref<1x1x32xf32, #tpu.memory_space<vmem>>, vector<1x1x32xf32>,
    } else {
    }
    %c0 = arith.constant 0 : index
    %c0_1 = arith.constant 0 : index
    %c0_2 = arith.constant 0 : index
    %3 = vector.load %arg3[%c0, %c0_1, %c0_2] : memref<1x1x32xf32, #tpu.memory_space<vmem>>, vector<1x1x32xf32>
    %c0_3 = arith.constant 0 : index
    %c0_4 = arith.constant 0 : index
    %c0_5 = arith.constant 0 : index
    %4 = vector.load %arg2[%c0_3, %c0_4, %c0_5] : memref<1x8x32xf32, #tpu.memory_space<vmem>>, vector<1x8x32xf32>
    %cst = arith.constant dense<0.000000e+00> : vector<1x32xf32>
    %5 = vector.multi_reduction <add>, %4, %cst [1] : vector<1x8x32xf32> to vector<1x32xf32>
    %6 = vector.shape_cast %5 : vector<1x32xf32> to vector<1x1x32xf32>
    %7 = arith.addf %3, %6 : vector<1x1x32xf32>
    %c0_6 = arith.constant 0 : index
    %c0_7 = arith.constant 0 : index
    %c0_8 = arith.constant 0 : index
    %8 = vector.load %arg3[%c0_6, %c0_7, %c0_8] : memref<1x1x32xf32, #tpu.memory_space<vmem>>, vector<1x1x32xf32>
    tpu.vector_store %arg3[%c0_6, %c0_7, %c0_8], %7 {strides = array<i32>} : memref<1x1x32xf32, #tpu.memory_space<vmem>>, vector<1x1x32xf32>,
    %c0_i32_9 = arith.constant 0 : i32
    %9 = arith.cmpi eq, %arg1, %c0_i32_9 : i32
    %10 = arith.extui %9 : i1 to i32
    %c0_i32_10 = arith.constant 0 : i32
    %11 = arith.cmpi ne, %10, %c0_i32_10 : i32
    scf.if %11 {
      %c0_11 = arith.constant 0 : index
      %c0_12 = arith.constant 0 : index
      %c0_13 = arith.constant 0 : index
      %12 = vector.load %arg3[%c0_11, %c0_12, %c0_13] : memref<1x1x32xf32, #tpu.memory_space<vmem>>, vector<1x1x32xf32>
      %cst_14 = arith.constant 1.250000e-01 : f32
      %13 = vector.broadcast %cst_14 : f32 to vector<1x1x32xf32>
      %14 = arith.mulf %12, %13 : vector<1x1x32xf32>
      %c0_15 = arith.constant 0 : index
      %c0_16 = arith.constant 0 : index
      %c0_17 = arith.constant 0 : index
      %15 = vector.load %arg3[%c0_15, %c0_16, %c0_17] : memref<1x1x32xf32, #tpu.memory_space<vmem>>, vector<1x1x32xf32>
      tpu.vector_store %arg3[%c0_15, %c0_16, %c0_17], %14 {strides = array<i32>} : memref<1x1x32xf32, #tpu.memory_space<vmem>>, vector<1x1x32xf32>,
    } else {
    }
    return
  }
  func.func @transform_0(%arg0: i32, %arg1: i32) -> (i32, i32, i32) {
    %c0_i32 = arith.constant 0 : i32
    %c0_i32_0 = arith.constant 0 : i32
    return %arg0, %arg1, %c0_i32 : i32, i32, i32
  }
  func.func @transform_1(%arg0: i32, %arg1: i32) -> (i32, i32, i32) {
    %c0_i32 = arith.constant 0 : i32
    %c0_i32_0 = arith.constant 0 : i32
    %c0_i32_1 = arith.constant 0 : i32
    return %arg0, %c0_i32, %c0_i32_0 : i32, i32, i32
  }
}

</mosaic_0001>

<bundles_post_ra>
// kernel: tpu_custom_call.1
= control target key start
LH: loop header
LB: loop body
LE: loop exit
PB: predicated region body
PF: predicated region fallthrough
CT: control target
= control target key end

     0   :  { %6 = vsyncpa [#allocation3], 0  ;;  %s636_s0 = inlined_call_operand.hbm [shape: f32[2,8,32], index: 0, kind: input, shape index: {}]   ;;  %s637_s1 = inlined_call_operand.hbm [shape: f32[2,1,32], index: 1, kind: output, shape index: {}]  }
   0x1   :  { %8 = vsyncpa [#allocation3 + $0x1], 0 }
   0x2   :  { %9 = vsyncpa [#allocation4], 0 }
   0x3   :  { %11 = vsyncpa [#allocation4 + $0x1], 0  ;;  %s460_s6 = smov 0   ;;  %s462_s7 = smov 0  }
   0x4   :  { %s464_s8 = smov 0   ;;  %s466_s9 = smov 0  }
   0x5   :  { %s468_s10 = smov 0   ;;  %s470_s11 = smov 0  }
   0x6 LB: > { %s259_s12 = sadd.s32 4294967295, %s445_s11   ;;  %s260_s13 = sadd.s32 4294967294, %s445_s11   ;;  %s445_s11 = sphi %s470_s11, %s17_s11   ;;  %s441_s10 = sphi %s468_s10, %s653_s10   ;;  %s437_s9 = sphi %s466_s9, %s652_s9   ;;  %s433_s8 = sphi %s464_s8, %s651_s8   ;;  %s429_s7 = sphi %s462_s7, %s650_s7   ;;  %s425_s6 = sphi %s460_s6, %s649_s6  }
   0x7   : > { %s29_s14 = sadd.s32 1, %s441_s10  ;;  %s38_s15 = sadd.s32 1, %s433_s8 }
   0x8   : > { %p31_p0 = scmp.ge.s32.totalorder %s29_s14, 2  ;;  %p45_p1 = scmp.ne.s32.totalorder %s433_s8, %s429_s7 }
   0x9   : > { %p46_p2 = scmp.eq.s32.totalorder %s445_s11, 0  ;;  %p51_p3 = scmp.ne.s32.totalorder %s429_s7, %s425_s6 }
   0xa   : > { %s655_s14 = smov (%p31_p0, %s29_s14), 0  ;;  %p52_p5 = scmp.eq.s32.totalorder %s259_s12, 0 }
   0xb   : > { %p501_p4 = por %p46_p2, %p45_p1  ;;  %s33_s17 = ssub.s32 %s441_s10, %s655_s14 }
   0xc   : > { %p75_p6 = scmp.eq.s32.totalorder %s259_s12, 1  ;;  %p36_p7 = scmp.eq.s32.totalorder %s33_s17, 0 }
   0xd   : > { %p507_p8 = por %p52_p5, %p51_p3  ;;  %p81_p10 = scmp.eq.s32.totalorder %s260_s13, 1 }
   0xe   : > { %p511_p9 = por %p75_p6, %p45_p1  ;;  %p282_p13 = scmp.lt.s32.totalorder %s445_s11, 2 }
   0xf   : > { %s516_s20 = scalar_select %p36_p7, %s433_s8, %s38_s15  }
  0x10   : > { %s641_s19 = scalar_select %p511_p9, 1, 0 }
  0x11   : > { %p518_p11 = por %p81_p10, %p51_p3  ;;  %s101_s22 = sand.u32 1, %s433_s8  }
  0x12   : > { %s263_s23 = sshll.u32 %s101_s22, 3  ;;  %s264_s24 = sshll.u32 %s441_s10, 7 }
  0x13   : > { %s642_s21 = scalar_select %p518_p11, 1, 0 }
  0x14   : > { %s529_s27 = scalar_lea.hbm %s636_s0, %s264_s24  ;;  %s105_s28 = scalar_lea.vmem [#allocation2], %s263_s23 }
  0x15   : > { %s113_s29 = sshll.u32 %s105_s28, 4  ;;  %p535_p0 = pnand %p282_p13, %p501_p4  ;;  %s531_s29 = int_to_ptr.vmem [resolvable:$true] %s113_s29 }
  0x16   : > { %s102_s2 = scalar_lea.sflag [#allocation3], %s101_s22  ;;  %s333_s3 = scalar_lea.hbm %s529_s27, 128 }
  0x17   : > { %p334_p3 = scmp.ne.s32.totalorder %s529_s27, %s333_s3  ;;  %p335_p5 = pneg %p535_p0 }
  0x18   : > { %s338_s12 = scalar_lea.hbm %s636_s0, 256  ;;  %p339_p4 = scmp.lt.u32.totalorder %s529_s27, %s636_s0 }
  0x19   : > { %p336_p6 = pnand %p335_p5, %p334_p3  ;;  %p340_p10 = scmp.lt.u32.totalorder %s338_s12, %s333_s3 }
  0x1a   : > { %p342_p12 = scmp.lt.u32.totalorder %s333_s3, %s529_s27 }
  0x1b   : > { %p337_p7 = pneg %p336_p6  ;;  %p341_p13 = por %p340_p10, %p339_p4 }
  0x1d   : > { %p343_p1 = por %p342_p12, %p341_p13 }
  0x1f   : > { %p344_p2 = pnand %p343_p1, %p337_p7 }
  0x21   : > { %347 = shalt.err (!%p344_p2)
}
  0x22   : > { %s348_s16 = scalar_lea.vmem %s531_s29, 128  ;;  %s447_s17 = smov [#allocation2]  }
  0x23   : > { %p349_p3 = scmp.ne.s32.totalorder %s531_s29, %s348_s16  ;;  %s353_s22 = sshll.u32 %s447_s17, 4  ;;  %s354_s22 = int_to_ptr.vmem [resolvable:$false] %s353_s22 }
  0x24   : > { %s355_s23 = scalar_lea.vmem %s354_s22, 256  ;;  %p356_p9 = scmp.lt.s32.totalorder %s531_s29, %s354_s22 }
  0x25   : > { %p351_p6 = pnand %p349_p3, %p335_p5  ;;  %p357_p4 = scmp.lt.s32.totalorder %s355_s23, %s348_s16 }
  0x27   : > { %p352_p11 = pneg %p351_p6  ;;  %p358_p10 = por %p357_p4, %p356_p9 }
  0x29   : > { %p359_p12 = pnand %p358_p10, %p352_p11 }
  0x2b   : > { %362 = shalt.err (!%p359_p12)
}
  0x2c   : > { %277 = dma.hbm_to_vmem [thread:$0]  (!%p535_p0), %s529_s27, 128, %s531_s29, %s102_s2  }
  0x2d   : > { %p644_p1 = scmp.lt.s32.totalorder %s445_s11, 3  ;;  %p645_p2 = scmp.ge.s32.totalorder %s445_s11, 1 }
  0x2f   : > { %p119_p5 = pnand %p645_p2, %p644_p1 }
  0x30   : > { %s571_s24 = sand.u32 (!%p119_p5), 1, %s429_s7  }
  0x31   : > { %122 = sbr.rel (%p119_p5) target bundleno = 97 (0x61), region = 24  ;;  %s266_s25 = sshll.u32 (!%p119_p5), %s571_s24, 3 }
  0x32   : > { %s125_s26 = scalar_lea.sflag (!%p119_p5), [#allocation3], %s571_s24  ;;  %s128_s28 = scalar_lea.vmem (!%p119_p5), [#allocation2], %s266_s25 }
  0x38   : > { %416 = dma.done.wait (%p507_p8), %s125_s26, 128  }
  0x39   : > { %418 = vsyncadd (%p507_p8), %s125_s26, 4294967168  ;;  %vm150_vm0 = vcmask 253952   ;;  %s145_s27 = scalar_lea.vmem [#allocation5], %s571_s24  ;;  %v448_v0 = vmov 0.0   ;;  %vm154_vm1 = vcmask 261120   ;;  %v153_v1 = vld [vmem:[%s128_s28] sm:$0xff] }
  0x3a   : > { %151 = vst.msk [vmem:[%s145_s27] sm:$0x1] %vm150_vm0, %v448_v0  ;;  %v155_v2 = vsel %vm154_vm1, %v153_v1, 0.0  ;;  %s267_s18 = sshll.u32 %s437_s9, 4  ;;  %s184_s29 = sshll.u32 %s145_s27, 4  ;;  %s588_s29 = int_to_ptr.vmem [resolvable:$true] %s184_s29 }
  0x3b   : > { %v156_v3 = vrot.slane %v155_v2, 4  ;;  %s586_s3 = scalar_lea.hbm %s637_s1, %s267_s18  ;;  %s172_s4 = scalar_lea.sflag [#allocation4], %s571_s24 }
  0x3c   : > { %s363_s5 = scalar_lea.vmem %s588_s29, 16  ;;  %p646_p9 = scmp.ne.s32.totalorder %s641_s19, 0 }
  0x3d   : > { %v157_v4 = vadd.f32 %v156_v3, %v155_v2  ;;  %p364_p8 = scmp.ne.s32.totalorder %s588_s29, %s363_s5  ;;  %s449_s9 = smov [#allocation5]  }
  0x3e   : > { %s367_s12 = sshll.u32 %s449_s9, 4  ;;  %s368_s12 = int_to_ptr.vmem [resolvable:$false] %s367_s12 }
  0x3f   : > { %v158_v5 = vrot.slane %v157_v4, 2  ;;  %p365_p11 = pnand %p364_p8, %p646_p9  ;;  %s369_s13 = scalar_lea.vmem %s368_s12, 32 }
  0x40   : > { %p370_p7 = scmp.lt.s32.totalorder %s588_s29, %s368_s12  ;;  %p371_p13 = scmp.lt.s32.totalorder %s369_s13, %s363_s5 }
  0x41   : > { %v159_v6 = vadd.f32 %v158_v5, %v157_v4  ;;  %v152_v8 = vld [vmem:[%s145_s27] sm:$0x1]  ;;  %p366_p0 = pneg %p365_p11 }
  0x42   : > { %p372_p3 = por %p371_p13, %p370_p7 }
  0x43   : > { %v160_v7 = vrot.slane %v159_v6, 1 }
  0x44   : > { %p373_p6 = pnand %p372_p3, %p366_p0 }
  0x45   : > { %v161_v9 = vadd.f32 %v160_v7, %v159_v6 }
  0x47   : > { %v162_v10 = vadd.f32 %v161_v9, %v152_v8 }
  0x49   : > { %164 = vst.msk [vmem:[%s145_s27] sm:$0x1] %vm150_vm0, %v162_v10 }
  0x50   : > { %v168_v11 = vld [vmem:[%s145_s27] sm:$0x1] }
  0x51   : > { %v169_v12 = vmul.f32 0.125, %v168_v11 }
  0x53   : > { %170 = vst.msk [vmem:[%s145_s27] sm:$0x1] %vm150_vm0, %v169_v12 }
  0x54   : > { %376 = shalt.err (!%p373_p6)
}
  0x55   : > { %s377_s15 = scalar_lea.hbm %s586_s3, 16  ;;  %s381_s22 = scalar_lea.hbm %s637_s1, 32 }
  0x56   : > { %p378_p4 = scmp.ne.s32.totalorder %s586_s3, %s377_s15  ;;  %p382_p1 = scmp.lt.u32.totalorder %s586_s3, %s637_s1 }
  0x57   : > { %p383_p2 = scmp.lt.u32.totalorder %s381_s22, %s377_s15  ;;  %p385_p8 = scmp.lt.u32.totalorder %s377_s15, %s586_s3 }
  0x58   : > { %p379_p10 = pnand %p378_p4, %p646_p9 }
  0x59   : > { %p384_p5 = por %p383_p2, %p382_p1 }
  0x5a   : > { %p380_p12 = pneg %p379_p10 }
  0x5b   : > { %p386_p11 = por %p385_p8, %p384_p5 }
  0x5d   : > { %p387_p0 = pnand %p386_p11, %p380_p12 }
  0x5f   : > { %390 = shalt.err (!%p387_p0)
}
  0x60   : > { %272 = dma.vmem_to_hbm [thread:$0]  (%p646_p9), %s588_s29, 16, %s586_s3, %s172_s4  }
  0x61 PF: > { %s196_s25 = sand.u32 1, %s425_s6   ;;  %p647_p7 = scmp.ne.s32.totalorder %s642_s21, 0 }
  0x62   : > { %p648_p13 = scmp.ge.s32.totalorder %s445_s11, 2  ;;  %s197_s26 = scalar_lea.sflag [#allocation4], %s196_s25 }
  0x64   : > { %p279_p3 = pnand %p648_p13, %p647_p7 }
  0x66   : > { %420 = dma.done.wait (!%p279_p3), %s197_s26, 16  }
  0x67   : > { %422 = vsyncadd (!%p279_p3), %s197_s26, 4294967280  ;;  %s17_s11 = sadd.s32 1, %s445_s11   ;;  %s649_s6 = smov %s429_s7 }
  0x68   : > { %p14_p6 = scmp.ge.s32.totalorder %s17_s11, 4   ;;  %s650_s7 = smov %s433_s8 }
  0x69   : > { %s651_s8 = smov %s516_s20  ;;  %s652_s9 = smov %s441_s10 }
  0x6a   : > { %s653_s10 = smov %s655_s14  ;;  %16 = sbr.rel (!%p14_p6) target bundleno = 6 (0x6), region = 77 }
  0x71   :  { %201 = vsyncpa [#allocation3], 1 }
  0x72   :  { %203 = vsyncpa [#allocation3 + $0x1], 1 }
  0x73   :  { %204 = vsyncpa [#allocation4], 1 }
  0x74   :  { %206 = vsyncpa [#allocation4 + $0x1], 1 }

</bundles_post_ra>
